<compile_context>
chip_gen: v6e
topology: v6e:2x2x1
jax: 0.10.0
libtpu: 0.0.40
codegen_flags: <defaults>
</compile_context>

<pallas_src>
import functools

import jax
import jax.numpy as jnp
from jax.experimental import pallas as pl
from jax.experimental.pallas import tpu as pltpu


def _round_up(n, m):
    return ((n + m - 1) // m) * m


def _vmem_limit_bytes():
    """Per-generation scoped-VMEM limit: half the per-core capacity, capped."""
    cap = None
    try:
        cap = getattr(pltpu.get_tpu_info(), "vmem_capacity_bytes", None)
    except Exception:
        cap = None
    if not cap:
        cap = 64 << 20                       # v7x-safe assumption (smallest VMEM/core)
    return int(min(cap // 2, 96 << 20))      # v7x -> 32 MiB, v5e/v6e -> 64 MiB


def _pick_tb(B, F, D, K1, itemsize, sub, vmem_limit):
    """Batch-tile rows: fill ~half the VMEM budget, keep >=2 grid steps when possible."""
    lane_pad = 128 * pl.cdiv(K1, 128)
    # Per batch row of a tile:
    #   double-buffered x stream           : 2 * F * D * itemsize
    #   lane-padded f32 post-matmul temps  : ~3 * F * lane_pad * 4  (xv, squares, relayout)
    per_row = 2 * F * D * itemsize + 3 * F * lane_pad * 4
    tb = (vmem_limit // 2) // per_row        # half budget -> weights/out/Mosaic headroom
    tb = min(tb, 8192)
    tb = min(tb, _round_up(pl.cdiv(B, 2), sub))   # >=2 grid steps (megacore) when B allows
    return max(sub, (tb // sub) * sub)


def _fm_kernel(x_ref, vw_ref, bv_ref, const_ref, out_ref, *, tb, f, k):
    k1 = k + 1
    x = x_ref[...]                                             # (tb*f, D), caller dtype

    # Single fused MXU pass: cols [0,k) = V(x), col k = W1(x); f32 accumulation.
    xv = jnp.dot(x, vw_ref[...], preferred_element_type=jnp.float32) + bv_ref[...]

    # Regroup rows into (batch, field) and reduce the field axis.
    # Layout no-op when f matches the 8-sublane grouping.
    # TODO(synk): field-loop accumulation to avoid a relayout copy when f % 8 != 0.
    xv3 = xv.reshape(tb, f, k1)
    s = jnp.sum(xv3, axis=1)                                   # (tb, k1)  sum_f xv
    sq = jnp.sum(jnp.square(xv3), axis=1)                      # (tb, k1)  sum_f xv^2

    inter = jnp.square(s) - sq                                 # (tb, k1)
    product = jnp.sum(inter[:, :k], axis=-1, keepdims=True)    # interaction cols [0, k)
    lin = s[:, k:k1]                                           # linear col k = sum_f x_f.w1

    # TODO(synk): a lane-dense (1, TB) output store would avoid 1-lane vst.msk
    # writebacks; kept as a (TB, 1) column since the output is tiny (few-% effect).
    out_ref[...] = lin + const_ref[0] + 0.5 * product          # (tb, 1)


def fm_forward(x, w1_w, w1_b, v_w, v_b, w0, *, tb=None, point_wise=True):
    """x: (B, F, D); w1_w: (1, D); w1_b: (1,); v_w: (K, D); v_b: (K,); w0: (1,)."""
    assert point_wise, "only point_wise=True (the module default) is implemented"
    B, F, D = x.shape
    K = v_w.shape[0]
    K1 = K + 1

    itemsize = jnp.dtype(x.dtype).itemsize
    sub = max(8, 32 // itemsize)             # sublane granule for the (packed) x dtype
    vmem_limit = _vmem_limit_bytes()
    if tb is None:
        TB = _pick_tb(B, F, D, K1, itemsize, sub, vmem_limit)
    else:
        TB = max(sub, _round_up(tb, sub))
    if pl.cdiv(B, TB) <= 1:
        TB = B                               # single step: exact full-array blocks
    grid = (pl.cdiv(B, TB),)                 # ragged tail handled by partial edge blocks

    # No pad / cast pass over x: metadata-only reshape, streamed in caller dtype.
    x2 = x.reshape(B * F, D)

    # Fuse W1 into V as column K (its bias folds into `const`); weights match x's
    # dtype so bf16 activations run the native bf16 x bf16 -> f32 MXU path.
    vw = jnp.concatenate([v_w.T, w1_w.T], axis=1).astype(x.dtype)              # (D, K+1)
    bv = jnp.concatenate(
        [v_b.reshape(1, K), jnp.zeros((1, 1), dtype=v_b.dtype)], axis=1
    ).astype(jnp.float32)                                                      # (1, K+1)
    const = (F * w1_b.reshape(()) + w0.reshape(())).astype(jnp.float32).reshape(1)

    kernel = functools.partial(_fm_kernel, tb=TB, f=F, k=K)

    return pl.pallas_call(
        kernel,
        out_shape=jax.ShapeDtypeStruct((B, 1), jnp.float32),
        grid=grid,
        in_specs=[
            pl.BlockSpec((TB * F, D), lambda i: (i, 0)),        # x tile (double-buffered)
            pl.BlockSpec((D, K1), lambda i: (0, 0)),            # fused V|W1 weights (resident)
            pl.BlockSpec((1, K1), lambda i: (0, 0)),            # V bias (resident)
            pl.BlockSpec(memory_space=pltpu.MemorySpace.SMEM),  # scalar const = F*b1 + W0
        ],
        out_specs=pl.BlockSpec((TB, 1), lambda i: (i, 0)),
        compiler_params=pltpu.CompilerParams(
            dimension_semantics=("parallel",),
            vmem_limit_bytes=vmem_limit,
        ),
    )(x2, vw, bv, const)


def fm_reference(x, w1_w, w1_b, v_w, v_b, w0):
    """Pure-JAX reference matching the PyTorch forward.  Matmul inputs use x.dtype
    with f32 accumulation, so it is exact for f32 x and bf16-fair for bf16 x."""
    B, F, D = x.shape
    x2 = x.reshape(B * F, D)
    w1x = jnp.dot(x2, w1_w.T.astype(x.dtype), preferred_element_type=jnp.float32)
    linear_part = (w1x + w1_b.astype(jnp.float32)).reshape(B, F, 1).sum(axis=-2) \
        + w0.astype(jnp.float32)                                           # (B, 1)
    xv = (jnp.dot(x2, v_w.T.astype(x.dtype), preferred_element_type=jnp.float32)
          + v_b.astype(jnp.float32)).reshape(B, F, -1)                     # (B, F, K)
    part1 = jnp.square(xv.sum(axis=-2))                                    # (B, K)
    part2 = jnp.square(xv).sum(axis=-2)                                    # (B, K)
    product = (part1 - part2).sum(axis=-1, keepdims=True)                  # (B, 1)
    return linear_part + 0.5 * product


if __name__ == "__main__":
    B, F, D, K = 2, 8, 32, 16

    key = jax.random.PRNGKey(0)
    kx, kw1, kb1, kv, kbv, kw0 = jax.random.split(key, 6)

    x_f32 = jax.random.normal(kx, (B, F, D), dtype=jnp.float32)
    w1_w = jax.random.normal(kw1, (1, D), dtype=jnp.float32) * 0.1   # nn.Linear(D, 1).weight
    w1_b = jax.random.normal(kb1, (1,), dtype=jnp.float32) * 0.1     # nn.Linear(D, 1).bias
    v_w = jax.random.normal(kv, (K, D), dtype=jnp.float32) * 0.1     # nn.Linear(D, K).weight
    v_b = jax.random.normal(kbv, (K,), dtype=jnp.float32) * 0.1      # nn.Linear(D, K).bias
    w0 = jax.random.normal(kw0, (1,), dtype=jnp.float32)             # self.W0

    # f32 activations: exact match against the f32 reference.
    out = jax.block_until_ready(fm_forward(x_f32, w1_w, w1_b, v_w, v_b, w0))
    ref = fm_reference(x_f32, w1_w, w1_b, v_w, v_b, w0)
    assert out.shape == (B, 1), out.shape
    assert jnp.allclose(out, ref, atol=1e-4, rtol=1e-4), (out, ref)

    # bf16 activations (halved HBM traffic on the x stream): compared against the
    # reference evaluated with the same bf16 MXU inputs / f32 accumulation.
    x_bf16 = x_f32.astype(jnp.bfloat16)
    out_bf = jax.block_until_ready(fm_forward(x_bf16, w1_w, w1_b, v_w, v_b, w0))
    ref_bf = fm_reference(x_bf16, w1_w, w1_b, v_w, v_b, w0)
    assert out_bf.shape == (B, 1), out_bf.shape
    assert jnp.allclose(out_bf, ref_bf, atol=5e-3, rtol=5e-3), (out_bf, ref_bf)

    print("KERNEL_OK")
</pallas_src>

<mosaic_0001>
module attributes {stable_mosaic.version = 11 : i64} {
  func.func @_fm_kernel(%arg0: i32, %arg1: memref<16x32xf32, #tpu.memory_space<vmem>>, %arg2: memref<32x17xf32, #tpu.memory_space<vmem>>, %arg3: memref<1x17xf32, #tpu.memory_space<vmem>>, %arg4: memref<1xf32, #tpu.memory_space<smem>>, %arg5: memref<2x1xf32, #tpu.memory_space<vmem>>) attributes {dimension_semantics = [#tpu.dimension_semantics<parallel>], iteration_bounds = array<i64: 1>, scalar_prefetch = 0 : i64, scratch_operands = 0 : i64, tpu.core_type = #tpu.core_type<tc>, window_params = [{transform_indices = @transform_0, window_bounds = array<i64: 16, 32>}, {pipeline_mode = #tpu.pipeline_mode<synchronous>, transform_indices = @transform_1, window_bounds = array<i64: 32, 17>}, {pipeline_mode = #tpu.pipeline_mode<synchronous>, transform_indices = @transform_2, window_bounds = array<i64: 1, 17>}, {transform_indices = @transform_3, window_bounds = array<i64: 1>}, {transform_indices = @transform_4, window_bounds = array<i64: 2, 1>}]} {
    %c0 = arith.constant 0 : index
    %c0_0 = arith.constant 0 : index
    %0 = vector.load %arg1[%c0, %c0_0] : memref<16x32xf32, #tpu.memory_space<vmem>>, vector<16x32xf32>
    %c0_1 = arith.constant 0 : index
    %c0_2 = arith.constant 0 : index
    %1 = vector.load %arg2[%c0_1, %c0_2] : memref<32x17xf32, #tpu.memory_space<vmem>>, vector<32x17xf32>
    %cst = arith.constant dense<0.000000e+00> : vector<16x17xf32>
    %2 = tpu.matmul %0, %1, %cst {dimension_numbers = #tpu.dot_dimension_numbers<[1], [0], [0], [1], [0, 0, 1, 1], [], []>} : vector<16x32xf32>, vector<32x17xf32>, vector<16x17xf32> -> vector<16x17xf32>
    %c0_3 = arith.constant 0 : index
    %c0_4 = arith.constant 0 : index
    %3 = vector.load %arg3[%c0_3, %c0_4] : memref<1x17xf32, #tpu.memory_space<vmem>>, vector<1x17xf32>
    %4 = vector.broadcast %3 : vector<1x17xf32> to vector<16x17xf32>
    %5 = arith.addf %2, %4 : vector<16x17xf32>
    %6 = vector.shape_cast %5 : vector<16x17xf32> to vector<2x8x17xf32>
    %cst_5 = arith.constant dense<0.000000e+00> : vector<2x17xf32>
    %7 = vector.multi_reduction <add>, %6, %cst_5 [1] : vector<2x8x17xf32> to vector<2x17xf32>
    %8 = arith.mulf %6, %6 : vector<2x8x17xf32>
    %cst_6 = arith.constant dense<0.000000e+00> : vector<2x17xf32>
    %9 = vector.multi_reduction <add>, %8, %cst_6 [1] : vector<2x8x17xf32> to vector<2x17xf32>
    %10 = arith.mulf %7, %7 : vector<2x17xf32>
    %11 = arith.subf %10, %9 : vector<2x17xf32>
    %12 = vector.extract_strided_slice %11 {offsets = [0, 0], sizes = [2, 16], strides = [1, 1]} : vector<2x17xf32> to vector<2x16xf32>
    %cst_7 = arith.constant dense<0.000000e+00> : vector<2xf32>
    %13 = vector.multi_reduction <add>, %12, %cst_7 [1] : vector<2x16xf32> to vector<2xf32>
    %14 = vector.shape_cast %13 : vector<2xf32> to vector<2x1xf32>
    %15 = vector.extract_strided_slice %7 {offsets = [0, 16], sizes = [2, 1], strides = [1, 1]} : vector<2x17xf32> to vector<2x1xf32>
    %c0_8 = arith.constant 0 : index
    %16 = memref.load %arg4[%c0_8] : memref<1xf32, #tpu.memory_space<smem>>
    %17 = vector.broadcast %16 : f32 to vector<2x1xf32>
    %18 = arith.addf %15, %17 : vector<2x1xf32>
    %cst_9 = arith.constant 5.000000e-01 : f32
    %19 = vector.broadcast %cst_9 : f32 to vector<2x1xf32>
    %20 = arith.mulf %19, %14 : vector<2x1xf32>
    %21 = arith.addf %18, %20 : vector<2x1xf32>
    %c0_10 = arith.constant 0 : index
    %c0_11 = arith.constant 0 : index
    %22 = vector.load %arg5[%c0_10, %c0_11] : memref<2x1xf32, #tpu.memory_space<vmem>>, vector<2x1xf32>
    tpu.vector_store %arg5[%c0_10, %c0_11], %21 {strides = array<i32>} : memref<2x1xf32, #tpu.memory_space<vmem>>, vector<2x1xf32>,
    return
  }
  func.func @transform_0(%arg0: i32) -> (i32, i32) {
    %c0_i32 = arith.constant 0 : i32
    %c0_i32_0 = arith.constant 0 : i32
    return %arg0, %c0_i32 : i32, i32
  }
  func.func @transform_1(%arg0: i32) -> (i32, i32) {
    %c0_i32 = arith.constant 0 : i32
    %c0_i32_0 = arith.constant 0 : i32
    %c0_i32_1 = arith.constant 0 : i32
    return %c0_i32, %c0_i32_0 : i32, i32
  }
  func.func @transform_2(%arg0: i32) -> (i32, i32) {
    %c0_i32 = arith.constant 0 : i32
    %c0_i32_0 = arith.constant 0 : i32
    %c0_i32_1 = arith.constant 0 : i32
    return %c0_i32, %c0_i32_0 : i32, i32
  }
  func.func @transform_3(%arg0: i32) -> i32 {
    %c0_i32 = arith.constant 0 : i32
    %c0_i32_0 = arith.constant 0 : i32
    return %c0_i32 : i32
  }
  func.func @transform_4(%arg0: i32) -> (i32, i32) {
    %c0_i32 = arith.constant 0 : i32
    %c0_i32_0 = arith.constant 0 : i32
    return %arg0, %c0_i32 : i32, i32
  }
}

</mosaic_0001>

<bundles_post_ra>
// kernel: tpu_custom_call.1
= control target key start
LH: loop header
LB: loop body
LE: loop exit
PB: predicated region body
PF: predicated region fallthrough
CT: control target
= control target key end

     0   :  { %vm31_vm0 = vcmask 261120   ;;  %vm113_vm1 = vcmask 138240   ;;  %vm150_vm2 = vcmask 1041409   ;;  %vm153_vm3 = vcmask 123904   ;;  %s259_s1 = inlined_call_operand.vmem [shape: f32[32,17], index: 1, kind: input, shape index: {}]   ;;  %s260_s0 = inlined_call_operand.vmem [shape: f32[16,32], index: 0, kind: input, shape index: {}]   ;;  %s261_s2 = inlined_call_operand.vmem [shape: f32[1,17], index: 2, kind: input, shape index: {}]   ;;  %s262_s3 = inlined_call_operand.<no memory space> [shape: f32[1], index: 3, kind: input, shape index: {}]   ;;  %s263_s4 = inlined_call_operand.vmem [shape: f32[2,1], index: 4, kind: output, shape index: {}]  }
   0x1   :  { %v23_v0 = vld [vmem:[%s259_s1 + $0x18] sm:$0xff]  ;;  %v22_v1 = vld [vmem:[%s259_s1 + $0x10] sm:$0xff]  ;;  %v18_v2 = vld [vmem:[%s260_s0] sm:$0xff]  ;;  %v158_v47 = vstv %s262_s3  ;;  %vm175_vm4 = vcmask 1024  }
   0x2   :  { %190 = vmatprep.subr.mxu0 %v23_v0  ;;  %v21_v3 = vld [vmem:[%s259_s1 + $0x8] sm:$0xff]  ;;  %198 = vmatprep.mubr.msk.f32.mxu0 %vm31_vm0, %v18_v2  ;;  %v20_v4 = vld [vmem:[%s259_s1] sm:$0xff] }
   0x3   :  { %191 = vmatpush3.msra.mxu0 %v23_v0  ;;  %v19_v5 = vld [vmem:[%s260_s0 + $0x8] sm:$0xff]  ;;  %v181_v6 = vld [vmem:[%s261_s2] ss:$0 sm:$0xff]  ;;  %s202_s2 = smov 112  }
   0x4   :  { %192 = vmatprep.subr.mxu0 %v22_v1 }
   0x5   :  { %193 = vmatpush3.msra.mxu0 %v22_v1 }
   0x6   :  { %194 = vmatprep.subr.mxu0 %v21_v3 }
   0x7   :  { %195 = vmatpush3.msra.mxu0 %v21_v3 }
   0x8   :  { %196 = vmatprep.subr.mxu0 %v20_v4 }
   0x9   :  { %197 = vmatpush3.msra.mxu0 %v20_v4 }
   0xa   :  { %199 = vmatmul.mubr.msk.f32.vlgmr.msra.gmra.mxu0 %vm31_vm0, %v19_v5 }
  0xca   :  { %v200_v7 = vpop.f32.mrf.mxu0 }
  0xcb   :  { %v110_v8 = vadd.f32 %v200_v7, %v181_v6 }
  0xcc   :  { %v104_v9 = vpop.f32.mrf.mxu0 }
  0xcd   :  { %v121_v10 = vsel %vm113_vm1, %v110_v8, 0.0  ;;  %v129_v11 = vmul.f32 %v110_v8, %v110_v8  ;;  %v105_v12 = vadd.f32 %v181_v6, %v104_v9 }
  0xce   :  { %v122_v13 = vrot.slane %v121_v10, 4 }
  0xcf   :  { %v137_v14 = vsel %vm113_vm1, %v129_v11, 0.0  ;;  %v114_v15 = vsel %vm113_vm1, %v105_v12, 0.0  ;;  %v128_v16 = vmul.f32 %v105_v12, %v105_v12 }
  0xd0   :  { %v123_v17 = vadd.f32 %v122_v13, %v121_v10  ;;  %v138_v18 = vrot.slane %v137_v14, 4  ;;  %v115_v19 = vrot.slane %v114_v15, 4 }
  0xd1   :  { %v130_v20 = vsel %vm113_vm1, %v128_v16, 0.0 }
  0xd2   :  { %v124_v21 = vrot.slane %v123_v17, 2  ;;  %v139_v22 = vadd.f32 %v138_v18, %v137_v14  ;;  %v116_v23 = vadd.f32 %v115_v19, %v114_v15  ;;  %v131_v24 = vrot.slane %v130_v20, 4 }
  0xd4   :  { %v125_v25 = vadd.f32 %v124_v21, %v123_v17  ;;  %v140_v26 = vrot.slane %v139_v22, 2  ;;  %v117_v27 = vrot.slane %v116_v23, 2  ;;  %v132_v28 = vadd.f32 %v131_v24, %v130_v20 }
  0xd6   :  { %v126_v29 = vrot.slane %v125_v25, 1  ;;  %v141_v30 = vadd.f32 %v140_v26, %v139_v22  ;;  %v118_v31 = vadd.f32 %v117_v27, %v116_v23  ;;  %v133_v32 = vrot.slane %v132_v28, 2 }
  0xd8   :  { %v127_v33 = vadd.f32 %v126_v29, %v125_v25  ;;  %v119_v34 = vrot.slane %v118_v31, 1  ;;  %v134_v35 = vadd.f32 %v133_v32, %v132_v28  ;;  %v142_v36 = vrot.slane %v141_v30, 1 }
  0xda   :  { %v120_v37 = vadd.f32 %v119_v34, %v118_v31  ;;  %v135_v38 = vrot.slane %v134_v35, 1  ;;  %v143_v39 = vadd.f32 %v142_v36, %v141_v30  ;;  %v145_v40 = vmul.f32 %v127_v33, %v127_v33 }
  0xdb   :  { %v160_v50 = vadd.f32 %v158_v47, %v127_v33 }
  0xdc   :  { %v136_v41 = vadd.f32 %v135_v38, %v134_v35  ;;  %v144_v42 = vmul.f32 %v120_v37, %v120_v37  ;;  %v147_v44 = vsub.f32 %v145_v40, %v143_v39  ;;  %v159_v52 = vadd.f32 %v158_v47, %v120_v37 }
  0xde   :  { %v146_v43 = vsub.f32 %v144_v42, %v136_v41 }
  0xe0   :  { %v151_v45 = vsel %vm150_vm2, %v147_v44, %v146_v43 }
  0xe1   :  { %v154_v46 = vsel %vm153_vm3, %v151_v45, 0.0 }
  0xe2   :  { %155 = vadd.xlane.f32.xlu0 %v154_v46 }
 0x16b   :  { %v156_v48 = vpop.xlane.xlu0 %155 }
 0x16c   :  { %v161_v49 = vmul.f32 0.5, %v156_v48 }
 0x16e   :  { %v163_v51 = vrot.slane %v161_v49, 1  ;;  %v166_v54 = vadd.f32 %v161_v49, %v159_v52 }
 0x170   :  { %v167_v53 = vadd.f32 %v163_v51, %v160_v50 }
 0x172   :  { %v170_v55 = vrot.slane %v167_v53, 7 }
 0x174   :  { %v171_v56 = vsel %vm150_vm2, %v170_v55, %v166_v54 }
 0x175   :  { %172 = vrot.lane.b32.xlu0 %v171_v56, %s202_s2 }
 0x1e7   :  { %v173_v57 = vpop.permute.xlu0 %172 }
 0x1e8   :  { %176 = vst.msk [vmem:[%s263_s4] sm:$0x3] %vm175_vm4, %v173_v57 }

</bundles_post_ra>
